<compile_context>
chip_gen: v6e
topology: v6e:2x2x1
jax: 0.10.0
libtpu: 0.0.40
codegen_flags: <defaults>
</compile_context>

<pallas_src>
import functools
import math

import jax
import jax.numpy as jnp
from jax.experimental import pallas as pl
from jax.experimental.pallas import tpu as pltpu

F32 = jnp.float32
BF16 = jnp.bfloat16


def _layernorm(x, gamma, beta, eps=1e-5):
    # x: (T, D), gamma/beta: (1, D). PyTorch LayerNorm: biased variance, eps=1e-5, f32.
    mean = jnp.mean(x, axis=-1, keepdims=True)
    var = jnp.mean((x - mean) ** 2, axis=-1, keepdims=True)
    inv = jax.lax.rsqrt(var + eps)
    return (x - mean) * inv * gamma + beta


def transformer_block_kernel(
    xq_ref, xf_ref,
    wq_ref, bq_ref, wkv_ref, bkv_ref, wo_ref, bo_ref,
    g1_ref, be1_ref, w1_ref, b1_ref, w2_ref, b2_ref, g2_ref, be2_ref,
    o_ref,
    kv_ref,
    *, num_heads, d_k, k_chunk,
):
    H, dk = num_heads, d_k
    D = H * dk
    S = kv_ref.shape[0]
    tq = xq_ref.shape[1]
    n_kc = S // k_chunk
    qi = pl.program_id(1)

    # ---- K|V projection: once per batch row, cached in VMEM scratch (bf16) ---------
    @pl.when(qi == 0)
    def _():
        xf = xf_ref[0]                                                  # (S, D) bf16
        kv = jnp.dot(xf, wkv_ref[...], preferred_element_type=F32) + bkv_ref[...]
        kv_ref[...] = kv.astype(BF16)

    # ---- Q projection for this query tile ------------------------------------------
    xq = xq_ref[0].astype(F32)                         # (tq, D) f32 residual copy
    q = jnp.dot(xq.astype(BF16), wq_ref[...], preferred_element_type=F32) + bq_ref[...]
    q3 = q.reshape(tq, H, dk).astype(BF16)             # (tq, H, dk) — no per-head slices

    # ---- attention: K-chunked online softmax, normalize after the PV matmul --------
    scale = 1.0 / math.sqrt(dk)
    m = l = acc = None
    for c in range(n_kc):                              # unrolled at trace time
        lo, hi = c * k_chunk, (c + 1) * k_chunk
        k_c = kv_ref[lo:hi, 0:D].reshape(k_chunk, H, dk)        # bf16
        v_c = kv_ref[lo:hi, D:2 * D].reshape(k_chunk, H, dk)    # bf16
        s = jnp.einsum("qhd,khd->hqk", q3, k_c,
                       preferred_element_type=F32) * scale      # (H, tq, tk) f32
        if c == 0:
            m = jnp.max(s, axis=-1, keepdims=True)
            p = jnp.exp(s - m)
            l = jnp.sum(p, axis=-1, keepdims=True)
            acc = jnp.einsum("hqk,khd->hqd", p.astype(BF16), v_c,
                             preferred_element_type=F32)
        else:
            m_new = jnp.maximum(m, jnp.max(s, axis=-1, keepdims=True))
            alpha = jnp.exp(m - m_new)
            p = jnp.exp(s - m_new)
            l = alpha * l + jnp.sum(p, axis=-1, keepdims=True)
            acc = alpha * acc + jnp.einsum("hqk,khd->hqd", p.astype(BF16), v_c,
                                           preferred_element_type=F32)
            m = m_new

    # post-PV normalization on (H, tq, dk): S/dk less VALU work than scaling (H,tq,S)
    ctx = acc * pl.reciprocal(l, approx=True)                    # (H, tq, dk)
    # equivalent to pltpu.einshape('hqd->qhd', ctx) followed by a merge of (H, dk)
    context = jnp.swapaxes(ctx, 0, 1).reshape(tq, D)             # (tq, D)

    attn_out = (jnp.dot(context.astype(BF16), wo_ref[...],
                        preferred_element_type=F32) + bo_ref[...])

    # residual + layernorm 1 (dropout == identity in eval mode)
    y = _layernorm(xq + attn_out, g1_ref[...], be1_ref[...])

    # ---- feed-forward ----------------------------------------------------------------
    hdn = jnp.dot(y.astype(BF16), w1_ref[...], preferred_element_type=F32) + b1_ref[...]
    hdn = jnp.maximum(hdn, 0.0)                                  # ReLU (f32)
    ff = jnp.dot(hdn.astype(BF16), w2_ref[...], preferred_element_type=F32) + b2_ref[...]

    # residual + layernorm 2
    z = _layernorm(y + ff, g2_ref[...], be2_ref[...])
    o_ref[0] = z.astype(o_ref.dtype)


def transformer_block(x, params, *, num_heads, q_tile=None, k_chunk=None):
    B, S, D = x.shape
    d_k = D // num_heads
    F_dim = params["w1"].shape[1]

    # Query tile: 128 rows when lane/sublane aligned (use 256 on v6e for long S if
    # desired), otherwise the whole (small) sequence so block dims == array dims.
    tq = q_tile if q_tile is not None else (128 if S % 128 == 0 else S)
    assert S % tq == 0
    n_q = S // tq
    # K chunk for the online-softmax loop (bounds scores to (H, tq, tk)).
    tk = k_chunk if k_chunk is not None else (512 if S % 512 == 0 else S)
    assert S % tk == 0

    # Pack K|V into one weight; matmul weights bf16 (f32 accumulation in-kernel).
    wq = params["wq"].astype(BF16)
    wkv = jnp.concatenate([params["wk"], params["wv"]], axis=1).astype(BF16)
    wo = params["wo"].astype(BF16)
    w1 = params["w1"].astype(BF16)
    w2 = params["w2"].astype(BF16)
    bq = params["bq"].astype(F32)
    bkv = jnp.concatenate([params["bk"], params["bv"]], axis=1).astype(F32)
    bo = params["bo"].astype(F32)
    b1 = params["b1"].astype(F32)
    b2 = params["b2"].astype(F32)
    g1, be1 = params["ln1_g"].astype(F32), params["ln1_b"].astype(F32)
    g2, be2 = params["ln2_g"].astype(F32), params["ln2_b"].astype(F32)

    x_bf = x.astype(BF16)   # K/V-path activation streamed in bf16 (halves DMA + VMEM)

    inputs = (x, x_bf, wq, bq, wkv, bkv, wo, bo, g1, be1, w1, b1, w2, b2, g2, be2)

    def wspec(shape):
        # Grid-invariant weight block: single-buffered (its block index never changes).
        return pl.BlockSpec(shape, lambda b, qi: (0, 0), pipeline_mode=pl.Buffered(1))

    in_specs = [
        pl.BlockSpec((1, tq, D), lambda b, qi: (b, qi, 0)),   # x   query tile (f32)
        pl.BlockSpec((1, S, D), lambda b, qi: (b, 0, 0)),     # x   full seq (bf16)
        wspec((D, D)), wspec((1, D)),                         # wq, bq
        wspec((D, 2 * D)), wspec((1, 2 * D)),                 # wkv, bkv (fused K|V)
        wspec((D, D)), wspec((1, D)),                         # wo, bo
        wspec((1, D)), wspec((1, D)),                         # ln1 gamma, beta
        wspec((D, F_dim)), wspec((1, F_dim)),                 # w1, b1
        wspec((F_dim, D)), wspec((1, D)),                     # w2, b2
        wspec((1, D)), wspec((1, D)),                         # ln2 gamma, beta
    ]
    out_specs = pl.BlockSpec((1, tq, D), lambda b, qi: (b, qi, 0))

    scratch_shapes = [pltpu.VMEM((S, 2 * D), BF16)]           # cached K|V projection

    # --- VMEM budget: generation-aware cap with headroom ------------------------------
    def nbytes(a):
        return int(a.size) * a.dtype.itemsize

    weight_bytes = sum(nbytes(a) for a in inputs[2:])          # single-buffered
    block_bytes = (
        2 * (tq * D * 4)                    # query tile (double-buffered, f32)
        + 2 * (S * D * 2)                   # full-seq activation (bf16)
        + 2 * (tq * D * x.dtype.itemsize)   # output tile
        + weight_bytes
        + S * 2 * D * 2                     # K|V VMEM scratch (bf16)
    )
    act_bytes = 4 * (
        num_heads * tq * tk * 2             # score chunk (f32) + bf16 copy
        + num_heads * tq * d_k * 2          # online-softmax accumulator / ctx
        + tq * (3 * D + F_dim)              # q / context / y / hdn temporaries
        + S * 2 * D                         # f32 K|V before the bf16 cast (qi == 0)
    )
    try:
        phys_vmem = int(getattr(pltpu.get_tpu_info(), "vmem_capacity_bytes",
                                64 * 1024 * 1024))
    except Exception:
        phys_vmem = 64 * 1024 * 1024        # conservative (v7x-sized) fallback
    vmem_cap = min(int(phys_vmem * 0.8), phys_vmem - 8 * 1024 * 1024)
    vmem_limit = int(min(max(block_bytes + act_bytes + 4 * 1024 * 1024,
                             32 * 1024 * 1024), vmem_cap))

    # --- advisory cost estimate (KV projection counted once per batch row) ------------
    flops = (
        2 * B * S * D * D                   # Q projection
        + 2 * B * S * D * (2 * D)           # fused K|V projection (once per batch row)
        + 4 * B * S * S * D                 # scores + PV
        + 2 * B * S * D * D                 # output projection
        + 4 * B * S * D * F_dim             # feed-forward
    )
    cost = pl.CostEstimate(
        flops=int(flops),
        transcendentals=int(B * num_heads * S * S),
        bytes_accessed=int(nbytes(x) + nbytes(x_bf)
                           + B * S * D * x.dtype.itemsize + weight_bytes),
    )

    kernel = functools.partial(transformer_block_kernel,
                               num_heads=num_heads, d_k=d_k, k_chunk=tk)

    return pl.pallas_call(
        kernel,
        out_shape=jax.ShapeDtypeStruct((B, S, D), x.dtype),
        grid_spec=pltpu.PrefetchScalarGridSpec(
            num_scalar_prefetch=0,
            grid=(B, n_q),
            in_specs=in_specs,
            out_specs=out_specs,
            scratch_shapes=scratch_shapes,
        ),
        compiler_params=pltpu.CompilerParams(
            # qi must be "arbitrary": the K|V scratch carries state across q-tiles.
            dimension_semantics=("parallel", "arbitrary"),
            vmem_limit_bytes=vmem_limit,
        ),
        cost_estimate=cost,
    )(*inputs)


def transformer_block_ref(x, params, *, num_heads):
    # Pure-JAX f32 reference mirroring the PyTorch module (eval mode).
    B, S, D = x.shape
    dk = D // num_heads

    def ln(v, g, b, eps=1e-5):
        mu = v.mean(-1, keepdims=True)
        var = ((v - mu) ** 2).mean(-1, keepdims=True)
        return (v - mu) / jnp.sqrt(var + eps) * g + b

    q = x @ params["wq"] + params["bq"]
    k = x @ params["wk"] + params["bk"]
    v = x @ params["wv"] + params["bv"]

    def split(t):
        return t.reshape(B, S, num_heads, dk).transpose(0, 2, 1, 3)

    qh, kh, vh = split(q), split(k), split(v)
    s = jnp.einsum("bhqd,bhkd->bhqk", qh, kh) / math.sqrt(dk)
    a = jax.nn.softmax(s, axis=-1)
    ctx = jnp.einsum("bhqk,bhkd->bhqd", a, vh).transpose(0, 2, 1, 3).reshape(B, S, D)
    attn = ctx @ params["wo"] + params["bo"]
    y = ln(x + attn, params["ln1_g"], params["ln1_b"])
    h = jnp.maximum(y @ params["w1"] + params["b1"], 0.0)
    ff = h @ params["w2"] + params["b2"]
    return ln(y + ff, params["ln2_g"], params["ln2_b"])


def init_params(key, d_model, num_heads, dim_feedforward):
    # Deterministic synthetic init mimicking PyTorch nn.Linear default:
    # U(-1/sqrt(fan_in), 1/sqrt(fan_in)). Weights stored as (in, out), all f32.
    keys = jax.random.split(key, 12)

    def linear(kw, kb, fan_in, fan_out):
        bound = 1.0 / math.sqrt(fan_in)
        w = jax.random.uniform(kw, (fan_in, fan_out), jnp.float32, -bound, bound)
        b = jax.random.uniform(kb, (1, fan_out), jnp.float32, -bound, bound)
        return w, b

    wq, bq = linear(keys[0], keys[1], d_model, d_model)
    wk, bk = linear(keys[2], keys[3], d_model, d_model)
    wv, bv = linear(keys[4], keys[5], d_model, d_model)
    wo, bo = linear(keys[6], keys[7], d_model, d_model)
    w1, b1 = linear(keys[8], keys[9], d_model, dim_feedforward)
    w2, b2 = linear(keys[10], keys[11], dim_feedforward, d_model)

    return {
        "wq": wq, "bq": bq, "wk": wk, "bk": bk, "wv": wv, "bv": bv,
        "wo": wo, "bo": bo,
        "ln1_g": jnp.ones((1, d_model), jnp.float32),
        "ln1_b": jnp.zeros((1, d_model), jnp.float32),
        "w1": w1, "b1": b1, "w2": w2, "b2": b2,
        "ln2_g": jnp.ones((1, d_model), jnp.float32),
        "ln2_b": jnp.zeros((1, d_model), jnp.float32),
    }


if __name__ == "__main__":
    B, S, D = 2, 8, 32
    num_heads = 4
    dim_feedforward = 64

    key = jax.random.PRNGKey(0)
    kx, kp = jax.random.split(key)
    x = jax.random.normal(kx, (B, S, D), jnp.float32)
    params = init_params(kp, D, num_heads, dim_feedforward)

    out = jax.block_until_ready(transformer_block(x, params, num_heads=num_heads))
    assert out.shape == (B, S, D)
    assert bool(jnp.all(jnp.isfinite(out)))

    # bf16 operands + approx softmax reciprocal: compare against f32 reference loosely.
    ref = transformer_block_ref(x, params, num_heads=num_heads)
    err = float(jnp.max(jnp.abs(out - ref)))
    assert err < 1e-1, f"max abs error vs f32 reference: {err}"
    print("KERNEL_OK")
</pallas_src>

<mosaic_0001>
module attributes {stable_mosaic.version = 11 : i64} {
  func.func @transformer_block_kernel(%arg0: i32, %arg1: i32, %arg2: memref<1x8x32xf32, #tpu.memory_space<vmem>>, %arg3: memref<1x8x32xbf16, #tpu.memory_space<vmem>>, %arg4: memref<32x32xbf16, #tpu.memory_space<vmem>>, %arg5: memref<1x32xf32, #tpu.memory_space<vmem>>, %arg6: memref<32x64xbf16, #tpu.memory_space<vmem>>, %arg7: memref<1x64xf32, #tpu.memory_space<vmem>>, %arg8: memref<32x32xbf16, #tpu.memory_space<vmem>>, %arg9: memref<1x32xf32, #tpu.memory_space<vmem>>, %arg10: memref<1x32xf32, #tpu.memory_space<vmem>>, %arg11: memref<1x32xf32, #tpu.memory_space<vmem>>, %arg12: memref<32x64xbf16, #tpu.memory_space<vmem>>, %arg13: memref<1x64xf32, #tpu.memory_space<vmem>>, %arg14: memref<64x32xbf16, #tpu.memory_space<vmem>>, %arg15: memref<1x32xf32, #tpu.memory_space<vmem>>, %arg16: memref<1x32xf32, #tpu.memory_space<vmem>>, %arg17: memref<1x32xf32, #tpu.memory_space<vmem>>, %arg18: memref<1x8x32xf32, #tpu.memory_space<vmem>>, %arg19: memref<8x64xbf16, #tpu.memory_space<vmem>>) attributes {dimension_semantics = [#tpu.dimension_semantics<parallel>, #tpu.dimension_semantics<arbitrary>], iteration_bounds = array<i64: 2, 1>, scalar_prefetch = 0 : i64, scratch_operands = 1 : i64, tpu.core_type = #tpu.core_type<tc>, window_params = [{transform_indices = @transform_0, window_bounds = array<i64: 1, 8, 32>}, {transform_indices = @transform_1, window_bounds = array<i64: 1, 8, 32>}, {pipeline_mode = #tpu.pipeline_mode<synchronous>, transform_indices = @transform_2, window_bounds = array<i64: 32, 32>}, {pipeline_mode = #tpu.pipeline_mode<synchronous>, transform_indices = @transform_3, window_bounds = array<i64: 1, 32>}, {pipeline_mode = #tpu.pipeline_mode<synchronous>, transform_indices = @transform_4, window_bounds = array<i64: 32, 64>}, {pipeline_mode = #tpu.pipeline_mode<synchronous>, transform_indices = @transform_5, window_bounds = array<i64: 1, 64>}, {pipeline_mode = #tpu.pipeline_mode<synchronous>, transform_indices = @transform_6, window_bounds = array<i64: 32, 32>}, {pipeline_mode = #tpu.pipeline_mode<synchronous>, transform_indices = @transform_7, window_bounds = array<i64: 1, 32>}, {pipeline_mode = #tpu.pipeline_mode<synchronous>, transform_indices = @transform_8, window_bounds = array<i64: 1, 32>}, {pipeline_mode = #tpu.pipeline_mode<synchronous>, transform_indices = @transform_9, window_bounds = array<i64: 1, 32>}, {pipeline_mode = #tpu.pipeline_mode<synchronous>, transform_indices = @transform_10, window_bounds = array<i64: 32, 64>}, {pipeline_mode = #tpu.pipeline_mode<synchronous>, transform_indices = @transform_11, window_bounds = array<i64: 1, 64>}, {pipeline_mode = #tpu.pipeline_mode<synchronous>, transform_indices = @transform_12, window_bounds = array<i64: 64, 32>}, {pipeline_mode = #tpu.pipeline_mode<synchronous>, transform_indices = @transform_13, window_bounds = array<i64: 1, 32>}, {pipeline_mode = #tpu.pipeline_mode<synchronous>, transform_indices = @transform_14, window_bounds = array<i64: 1, 32>}, {pipeline_mode = #tpu.pipeline_mode<synchronous>, transform_indices = @transform_15, window_bounds = array<i64: 1, 32>}, {transform_indices = @transform_16, window_bounds = array<i64: 1, 8, 32>}]} {
    %c0_i32 = arith.constant 0 : i32
    %0 = arith.cmpi eq, %arg1, %c0_i32 : i32
    %1 = arith.extui %0 : i1 to i32
    %c0_i32_0 = arith.constant 0 : i32
    %2 = arith.cmpi ne, %1, %c0_i32_0 : i32
    scf.if %2 {
      %c0_52 = arith.constant 0 : index
      %c0_53 = arith.constant 0 : index
      %c0_54 = arith.constant 0 : index
      %107 = vector.load %arg3[%c0_52, %c0_53, %c0_54] : memref<1x8x32xbf16, #tpu.memory_space<vmem>>, vector<1x8x32xbf16>
      %108 = vector.shape_cast %107 : vector<1x8x32xbf16> to vector<8x32xbf16>
      %c0_55 = arith.constant 0 : index
      %c0_56 = arith.constant 0 : index
      %109 = vector.load %arg6[%c0_55, %c0_56] : memref<32x64xbf16, #tpu.memory_space<vmem>>, vector<32x64xbf16>
      %cst_57 = arith.constant dense<0.000000e+00> : vector<8x64xf32>
      %110 = tpu.matmul %108, %109, %cst_57 {dimension_numbers = #tpu.dot_dimension_numbers<[1], [0], [0], [1], [0, 0, 1, 1], [], []>} : vector<8x32xbf16>, vector<32x64xbf16>, vector<8x64xf32> -> vector<8x64xf32>
      %c0_58 = arith.constant 0 : index
      %c0_59 = arith.constant 0 : index
      %111 = vector.load %arg7[%c0_58, %c0_59] : memref<1x64xf32, #tpu.memory_space<vmem>>, vector<1x64xf32>
      %112 = vector.broadcast %111 : vector<1x64xf32> to vector<8x64xf32>
      %113 = arith.addf %110, %112 : vector<8x64xf32>
      %114 = arith.truncf %113 : vector<8x64xf32> to vector<8x64xbf16>
      %c0_60 = arith.constant 0 : index
      %c0_61 = arith.constant 0 : index
      %115 = vector.load %arg19[%c0_60, %c0_61] : memref<8x64xbf16, #tpu.memory_space<vmem>>, vector<8x64xbf16>
      tpu.vector_store %arg19[%c0_60, %c0_61], %114 {strides = array<i32>} : memref<8x64xbf16, #tpu.memory_space<vmem>>, vector<8x64xbf16>,
    } else {
    }
    %c0 = arith.constant 0 : index
    %c0_1 = arith.constant 0 : index
    %c0_2 = arith.constant 0 : index
    %3 = vector.load %arg2[%c0, %c0_1, %c0_2] : memref<1x8x32xf32, #tpu.memory_space<vmem>>, vector<1x8x32xf32>
    %4 = vector.shape_cast %3 : vector<1x8x32xf32> to vector<8x32xf32>
    %5 = arith.truncf %4 : vector<8x32xf32> to vector<8x32xbf16>
    %c0_3 = arith.constant 0 : index
    %c0_4 = arith.constant 0 : index
    %6 = vector.load %arg4[%c0_3, %c0_4] : memref<32x32xbf16, #tpu.memory_space<vmem>>, vector<32x32xbf16>
    %cst = arith.constant dense<0.000000e+00> : vector<8x32xf32>
    %7 = tpu.matmul %5, %6, %cst {dimension_numbers = #tpu.dot_dimension_numbers<[1], [0], [0], [1], [0, 0, 1, 1], [], []>} : vector<8x32xbf16>, vector<32x32xbf16>, vector<8x32xf32> -> vector<8x32xf32>
    %c0_5 = arith.constant 0 : index
    %c0_6 = arith.constant 0 : index
    %8 = vector.load %arg5[%c0_5, %c0_6] : memref<1x32xf32, #tpu.memory_space<vmem>>, vector<1x32xf32>
    %9 = vector.broadcast %8 : vector<1x32xf32> to vector<8x32xf32>
    %10 = arith.addf %7, %9 : vector<8x32xf32>
    %11 = vector.shape_cast %10 : vector<8x32xf32> to vector<8x4x8xf32>
    %12 = arith.truncf %11 : vector<8x4x8xf32> to vector<8x4x8xbf16>
    %c0_7 = arith.constant 0 : index
    %c0_8 = arith.constant 0 : index
    %13 = vector.load %arg19[%c0_7, %c0_8] : memref<8x64xbf16, #tpu.memory_space<vmem>>, vector<8x32xbf16>
    %14 = vector.shape_cast %13 : vector<8x32xbf16> to vector<8x4x8xbf16>
    %c0_9 = arith.constant 0 : index
    %c32 = arith.constant 32 : index
    %15 = vector.load %arg19[%c0_9, %c32] : memref<8x64xbf16, #tpu.memory_space<vmem>>, vector<8x32xbf16>
    %16 = vector.shape_cast %15 : vector<8x32xbf16> to vector<8x4x8xbf16>
    "tpu.trace_start"() <{level = 10 : i32, message = "qhd,khd->hqk"}> : () -> ()
    %cst_10 = arith.constant dense<0.000000e+00> : vector<4x8x8xf32>
    %17 = tpu.matmul %12, %14, %cst_10 {dimension_numbers = #tpu.dot_dimension_numbers<[2], [2], [0], [0], [0, 1, 0, 0, 1, 0], [1], [1]>} : vector<8x4x8xbf16>, vector<8x4x8xbf16>, vector<4x8x8xf32> -> vector<4x8x8xf32>
    "tpu.trace_stop"() : () -> ()
    %cst_11 = arith.constant 0.353553385 : f32
    %18 = vector.broadcast %cst_11 : f32 to vector<4x8x8xf32>
    %19 = arith.mulf %17, %18 : vector<4x8x8xf32>
    %cst_12 = arith.constant dense<0xFF800000> : vector<4x8xf32>
    %20 = vector.multi_reduction <maximumf>, %19, %cst_12 [2] : vector<4x8x8xf32> to vector<4x8xf32>
    %21 = vector.shape_cast %20 : vector<4x8xf32> to vector<4x8x1xf32>
    %22 = vector.broadcast %21 : vector<4x8x1xf32> to vector<4x8x8xf32>
    %23 = arith.subf %19, %22 : vector<4x8x8xf32>
    %24 = math.exp %23 : vector<4x8x8xf32>
    %cst_13 = arith.constant dense<0.000000e+00> : vector<4x8xf32>
    %25 = vector.multi_reduction <add>, %24, %cst_13 [2] : vector<4x8x8xf32> to vector<4x8xf32>
    %26 = vector.shape_cast %25 : vector<4x8xf32> to vector<4x8x1xf32>
    %27 = arith.truncf %24 : vector<4x8x8xf32> to vector<4x8x8xbf16>
    "tpu.trace_start"() <{level = 10 : i32, message = "hqk,khd->hqd"}> : () -> ()
    %cst_14 = arith.constant dense<0.000000e+00> : vector<4x8x8xf32>
    %28 = tpu.matmul %27, %16, %cst_14 {dimension_numbers = #tpu.dot_dimension_numbers<[2], [0], [1], [2], [0, 0, 0, 1, 1, 2], [0], [1]>} : vector<4x8x8xbf16>, vector<8x4x8xbf16>, vector<4x8x8xf32> -> vector<4x8x8xf32>
    "tpu.trace_stop"() : () -> ()
    %29 = tpu.reciprocal %26 {approx = true} : vector<4x8x1xf32> -> vector<4x8x1xf32>
    %30 = vector.broadcast %29 : vector<4x8x1xf32> to vector<4x8x8xf32>
    %31 = arith.mulf %28, %30 : vector<4x8x8xf32>
    %32 = tpu.transpose %31, [1, 0, 2] : vector<4x8x8xf32> -> vector<8x4x8xf32>
    %33 = vector.shape_cast %32 : vector<8x4x8xf32> to vector<8x32xf32>
    %34 = arith.truncf %33 : vector<8x32xf32> to vector<8x32xbf16>
    %c0_15 = arith.constant 0 : index
    %c0_16 = arith.constant 0 : index
    %35 = vector.load %arg8[%c0_15, %c0_16] : memref<32x32xbf16, #tpu.memory_space<vmem>>, vector<32x32xbf16>
    %cst_17 = arith.constant dense<0.000000e+00> : vector<8x32xf32>
    %36 = tpu.matmul %34, %35, %cst_17 {dimension_numbers = #tpu.dot_dimension_numbers<[1], [0], [0], [1], [0, 0, 1, 1], [], []>} : vector<8x32xbf16>, vector<32x32xbf16>, vector<8x32xf32> -> vector<8x32xf32>
    %c0_18 = arith.constant 0 : index
    %c0_19 = arith.constant 0 : index
    %37 = vector.load %arg9[%c0_18, %c0_19] : memref<1x32xf32, #tpu.memory_space<vmem>>, vector<1x32xf32>
    %38 = vector.broadcast %37 : vector<1x32xf32> to vector<8x32xf32>
    %39 = arith.addf %36, %38 : vector<8x32xf32>
    %40 = arith.addf %4, %39 : vector<8x32xf32>
    %c0_20 = arith.constant 0 : index
    %c0_21 = arith.constant 0 : index
    %41 = vector.load %arg10[%c0_20, %c0_21] : memref<1x32xf32, #tpu.memory_space<vmem>>, vector<1x32xf32>
    %c0_22 = arith.constant 0 : index
    %c0_23 = arith.constant 0 : index
    %42 = vector.load %arg11[%c0_22, %c0_23] : memref<1x32xf32, #tpu.memory_space<vmem>>, vector<1x32xf32>
    %cst_24 = arith.constant dense<0.000000e+00> : vector<8xf32>
    %43 = vector.multi_reduction <add>, %40, %cst_24 [1] : vector<8x32xf32> to vector<8xf32>
    %44 = vector.shape_cast %43 : vector<8xf32> to vector<8x1xf32>
    %cst_25 = arith.constant 3.200000e+01 : f32
    %45 = vector.broadcast %cst_25 : f32 to vector<8x1xf32>
    %46 = arith.divf %44, %45 : vector<8x1xf32>
    %47 = vector.broadcast %46 : vector<8x1xf32> to vector<8x32xf32>
    %48 = arith.subf %40, %47 : vector<8x32xf32>
    %49 = arith.mulf %48, %48 : vector<8x32xf32>
    %cst_26 = arith.constant dense<0.000000e+00> : vector<8xf32>
    %50 = vector.multi_reduction <add>, %49, %cst_26 [1] : vector<8x32xf32> to vector<8xf32>
    %51 = vector.shape_cast %50 : vector<8xf32> to vector<8x1xf32>
    %cst_27 = arith.constant 3.200000e+01 : f32
    %52 = vector.broadcast %cst_27 : f32 to vector<8x1xf32>
    %53 = arith.divf %51, %52 : vector<8x1xf32>
    %cst_28 = arith.constant 9.99999974E-6 : f32
    %54 = vector.broadcast %cst_28 : f32 to vector<8x1xf32>
    %55 = arith.addf %53, %54 : vector<8x1xf32>
    %56 = math.rsqrt %55 : vector<8x1xf32>
    %57 = vector.broadcast %46 : vector<8x1xf32> to vector<8x32xf32>
    %58 = arith.subf %40, %57 : vector<8x32xf32>
    %59 = vector.broadcast %56 : vector<8x1xf32> to vector<8x32xf32>
    %60 = arith.mulf %58, %59 : vector<8x32xf32>
    %61 = vector.broadcast %41 : vector<1x32xf32> to vector<8x32xf32>
    %62 = arith.mulf %60, %61 : vector<8x32xf32>
    %63 = vector.broadcast %42 : vector<1x32xf32> to vector<8x32xf32>
    %64 = arith.addf %62, %63 : vector<8x32xf32>
    %65 = arith.truncf %64 : vector<8x32xf32> to vector<8x32xbf16>
    %c0_29 = arith.constant 0 : index
    %c0_30 = arith.constant 0 : index
    %66 = vector.load %arg12[%c0_29, %c0_30] : memref<32x64xbf16, #tpu.memory_space<vmem>>, vector<32x64xbf16>
    %cst_31 = arith.constant dense<0.000000e+00> : vector<8x64xf32>
    %67 = tpu.matmul %65, %66, %cst_31 {dimension_numbers = #tpu.dot_dimension_numbers<[1], [0], [0], [1], [0, 0, 1, 1], [], []>} : vector<8x32xbf16>, vector<32x64xbf16>, vector<8x64xf32> -> vector<8x64xf32>
    %c0_32 = arith.constant 0 : index
    %c0_33 = arith.constant 0 : index
    %68 = vector.load %arg13[%c0_32, %c0_33] : memref<1x64xf32, #tpu.memory_space<vmem>>, vector<1x64xf32>
    %69 = vector.broadcast %68 : vector<1x64xf32> to vector<8x64xf32>
    %70 = arith.addf %67, %69 : vector<8x64xf32>
    %cst_34 = arith.constant 0.000000e+00 : f32
    %71 = vector.broadcast %cst_34 : f32 to vector<8x64xf32>
    %72 = arith.maximumf %70, %71 : vector<8x64xf32>
    %73 = arith.truncf %72 : vector<8x64xf32> to vector<8x64xbf16>
    %c0_35 = arith.constant 0 : index
    %c0_36 = arith.constant 0 : index
    %74 = vector.load %arg14[%c0_35, %c0_36] : memref<64x32xbf16, #tpu.memory_space<vmem>>, vector<64x32xbf16>
    %cst_37 = arith.constant dense<0.000000e+00> : vector<8x32xf32>
    %75 = tpu.matmul %73, %74, %cst_37 {dimension_numbers = #tpu.dot_dimension_numbers<[1], [0], [0], [1], [0, 0, 1, 1], [], []>} : vector<8x64xbf16>, vector<64x32xbf16>, vector<8x32xf32> -> vector<8x32xf32>
    %c0_38 = arith.constant 0 : index
    %c0_39 = arith.constant 0 : index
    %76 = vector.load %arg15[%c0_38, %c0_39] : memref<1x32xf32, #tpu.memory_space<vmem>>, vector<1x32xf32>
    %77 = vector.broadcast %76 : vector<1x32xf32> to vector<8x32xf32>
    %78 = arith.addf %75, %77 : vector<8x32xf32>
    %79 = arith.addf %64, %78 : vector<8x32xf32>
    %c0_40 = arith.constant 0 : index
    %c0_41 = arith.constant 0 : index
    %80 = vector.load %arg16[%c0_40, %c0_41] : memref<1x32xf32, #tpu.memory_space<vmem>>, vector<1x32xf32>
    %c0_42 = arith.constant 0 : index
    %c0_43 = arith.constant 0 : index
    %81 = vector.load %arg17[%c0_42, %c0_43] : memref<1x32xf32, #tpu.memory_space<vmem>>, vector<1x32xf32>
    %cst_44 = arith.constant dense<0.000000e+00> : vector<8xf32>
    %82 = vector.multi_reduction <add>, %79, %cst_44 [1] : vector<8x32xf32> to vector<8xf32>
    %83 = vector.shape_cast %82 : vector<8xf32> to vector<8x1xf32>
    %cst_45 = arith.constant 3.200000e+01 : f32
    %84 = vector.broadcast %cst_45 : f32 to vector<8x1xf32>
    %85 = arith.divf %83, %84 : vector<8x1xf32>
    %86 = vector.broadcast %85 : vector<8x1xf32> to vector<8x32xf32>
    %87 = arith.subf %79, %86 : vector<8x32xf32>
    %88 = arith.mulf %87, %87 : vector<8x32xf32>
    %cst_46 = arith.constant dense<0.000000e+00> : vector<8xf32>
    %89 = vector.multi_reduction <add>, %88, %cst_46 [1] : vector<8x32xf32> to vector<8xf32>
    %90 = vector.shape_cast %89 : vector<8xf32> to vector<8x1xf32>
    %cst_47 = arith.constant 3.200000e+01 : f32
    %91 = vector.broadcast %cst_47 : f32 to vector<8x1xf32>
    %92 = arith.divf %90, %91 : vector<8x1xf32>
    %cst_48 = arith.constant 9.99999974E-6 : f32
    %93 = vector.broadcast %cst_48 : f32 to vector<8x1xf32>
    %94 = arith.addf %92, %93 : vector<8x1xf32>
    %95 = math.rsqrt %94 : vector<8x1xf32>
    %96 = vector.broadcast %85 : vector<8x1xf32> to vector<8x32xf32>
    %97 = arith.subf %79, %96 : vector<8x32xf32>
    %98 = vector.broadcast %95 : vector<8x1xf32> to vector<8x32xf32>
    %99 = arith.mulf %97, %98 : vector<8x32xf32>
    %100 = vector.broadcast %80 : vector<1x32xf32> to vector<8x32xf32>
    %101 = arith.mulf %99, %100 : vector<8x32xf32>
    %102 = vector.broadcast %81 : vector<1x32xf32> to vector<8x32xf32>
    %103 = arith.addf %101, %102 : vector<8x32xf32>
    %c0_49 = arith.constant 0 : index
    %c0_50 = arith.constant 0 : index
    %c0_51 = arith.constant 0 : index
    %104 = vector.load %arg18[%c0_49, %c0_50, %c0_51] : memref<1x8x32xf32, #tpu.memory_space<vmem>>, vector<1x8x32xf32>
    %105 = vector.shape_cast %104 : vector<1x8x32xf32> to vector<8x32xf32>
    %106 = vector.shape_cast %103 : vector<8x32xf32> to vector<1x8x32xf32>
    tpu.vector_store %arg18[%c0_49, %c0_50, %c0_51], %106 {strides = array<i32>} : memref<1x8x32xf32, #tpu.memory_space<vmem>>, vector<1x8x32xf32>,
    return
  }
  func.func @transform_0(%arg0: i32, %arg1: i32) -> (i32, i32, i32) {
    %c0_i32 = arith.constant 0 : i32
    %c0_i32_0 = arith.constant 0 : i32
    return %arg0, %arg1, %c0_i32 : i32, i32, i32
  }
  func.func @transform_1(%arg0: i32, %arg1: i32) -> (i32, i32, i32) {
    %c0_i32 = arith.constant 0 : i32
    %c0_i32_0 = arith.constant 0 : i32
    %c0_i32_1 = arith.constant 0 : i32
    return %arg0, %c0_i32, %c0_i32_0 : i32, i32, i32
  }
  func.func @transform_2(%arg0: i32, %arg1: i32) -> (i32, i32) {
    %c0_i32 = arith.constant 0 : i32
    %c0_i32_0 = arith.constant 0 : i32
    %c0_i32_1 = arith.constant 0 : i32
    return %c0_i32, %c0_i32_0 : i32, i32
  }
  func.func @transform_3(%arg0: i32, %arg1: i32) -> (i32, i32) {
    %c0_i32 = arith.constant 0 : i32
    %c0_i32_0 = arith.constant 0 : i32
    %c0_i32_1 = arith.constant 0 : i32
    return %c0_i32, %c0_i32_0 : i32, i32
  }
  func.func @transform_4(%arg0: i32, %arg1: i32) -> (i32, i32) {
    %c0_i32 = arith.constant 0 : i32
    %c0_i32_0 = arith.constant 0 : i32
    %c0_i32_1 = arith.constant 0 : i32
    return %c0_i32, %c0_i32_0 : i32, i32
  }
  func.func @transform_5(%arg0: i32, %arg1: i32) -> (i32, i32) {
    %c0_i32 = arith.constant 0 : i32
    %c0_i32_0 = arith.constant 0 : i32
    %c0_i32_1 = arith.constant 0 : i32
    return %c0_i32, %c0_i32_0 : i32, i32
  }
  func.func @transform_6(%arg0: i32, %arg1: i32) -> (i32, i32) {
    %c0_i32 = arith.constant 0 : i32
    %c0_i32_0 = arith.constant 0 : i32
    %c0_i32_1 = arith.constant 0 : i32
    return %c0_i32, %c0_i32_0 : i32, i32
  }
  func.func @transform_7(%arg0: i32, %arg1: i32) -> (i32, i32) {
    %c0_i32 = arith.constant 0 : i32
    %c0_i32_0 = arith.constant 0 : i32
    %c0_i32_1 = arith.constant 0 : i32
    return %c0_i32, %c0_i32_0 : i32, i32
  }
  func.func @transform_8(%arg0: i32, %arg1: i32) -> (i32, i32) {
    %c0_i32 = arith.constant 0 : i32
    %c0_i32_0 = arith.constant 0 : i32
    %c0_i32_1 = arith.constant 0 : i32
    return %c0_i32, %c0_i32_0 : i32, i32
  }
  func.func @transform_9(%arg0: i32, %arg1: i32) -> (i32, i32) {
    %c0_i32 = arith.constant 0 : i32
    %c0_i32_0 = arith.constant 0 : i32
    %c0_i32_1 = arith.constant 0 : i32
    return %c0_i32, %c0_i32_0 : i32, i32
  }
  func.func @transform_10(%arg0: i32, %arg1: i32) -> (i32, i32) {
    %c0_i32 = arith.constant 0 : i32
    %c0_i32_0 = arith.constant 0 : i32
    %c0_i32_1 = arith.constant 0 : i32
    return %c0_i32, %c0_i32_0 : i32, i32
  }
  func.func @transform_11(%arg0: i32, %arg1: i32) -> (i32, i32) {
    %c0_i32 = arith.constant 0 : i32
    %c0_i32_0 = arith.constant 0 : i32
    %c0_i32_1 = arith.constant 0 : i32
    return %c0_i32, %c0_i32_0 : i32, i32
  }
  func.func @transform_12(%arg0: i32, %arg1: i32) -> (i32, i32) {
    %c0_i32 = arith.constant 0 : i32
    %c0_i32_0 = arith.constant 0 : i32
    %c0_i32_1 = arith.constant 0 : i32
    return %c0_i32, %c0_i32_0 : i32, i32
  }
  func.func @transform_13(%arg0: i32, %arg1: i32) -> (i32, i32) {
    %c0_i32 = arith.constant 0 : i32
    %c0_i32_0 = arith.constant 0 : i32
    %c0_i32_1 = arith.constant 0 : i32
    return %c0_i32, %c0_i32_0 : i32, i32
  }
  func.func @transform_14(%arg0: i32, %arg1: i32) -> (i32, i32) {
    %c0_i32 = arith.constant 0 : i32
    %c0_i32_0 = arith.constant 0 : i32
    %c0_i32_1 = arith.constant 0 : i32
    return %c0_i32, %c0_i32_0 : i32, i32
  }
  func.func @transform_15(%arg0: i32, %arg1: i32) -> (i32, i32) {
    %c0_i32 = arith.constant 0 : i32
    %c0_i32_0 = arith.constant 0 : i32
    %c0_i32_1 = arith.constant 0 : i32
    return %c0_i32, %c0_i32_0 : i32, i32
  }
  func.func @transform_16(%arg0: i32, %arg1: i32) -> (i32, i32, i32) {
    %c0_i32 = arith.constant 0 : i32
    %c0_i32_0 = arith.constant 0 : i32
    return %arg0, %arg1, %c0_i32 : i32, i32, i32
  }
}

</mosaic_0001>

<bundles_post_ra>
// kernel: tpu_custom_call.1
= control target key start
LH: loop header
LB: loop body
LE: loop exit
PB: predicated region body
PF: predicated region fallthrough
CT: control target
= control target key end

     0   :  { %s3010_s0 = inlined_call_operand.vmem [shape: f32[2,8,32], index: 0, kind: input, shape index: {}]   ;;  %s3011_s1 = inlined_call_operand.hbm [shape: bf16[2,8,32], index: 1, kind: input, shape index: {}]   ;;  %s3012_s2 = inlined_call_operand.vmem [shape: bf16[32,32], index: 2, kind: input, shape index: {}]   ;;  %s3013_s3 = inlined_call_operand.vmem [shape: f32[1,32], index: 3, kind: input, shape index: {}]   ;;  %s3014_s4 = inlined_call_operand.vmem [shape: bf16[32,64], index: 4, kind: input, shape index: {}]   ;;  %s3015_s5 = inlined_call_operand.vmem [shape: f32[1,64], index: 5, kind: input, shape index: {}]   ;;  %s3016_s6 = inlined_call_operand.hbm [shape: bf16[32,32], index: 6, kind: input, shape index: {}]   ;;  %s3017_s7 = inlined_call_operand.vmem [shape: f32[1,32], index: 7, kind: input, shape index: {}]   ;;  %s3018_s8 = inlined_call_operand.vmem [shape: f32[1,32], index: 8, kind: input, shape index: {}]   ;;  %s3019_s9 = inlined_call_operand.vmem [shape: f32[1,32], index: 9, kind: input, shape index: {}]   ;;  %s3020_s10 = inlined_call_operand.hbm [shape: bf16[32,64], index: 10, kind: input, shape index: {}]   ;;  %s3021_s11 = inlined_call_operand.hbm [shape: f32[1,64], index: 11, kind: input, shape index: {}]   ;;  %s3022_s12 = inlined_call_operand.vmem [shape: bf16[64,32], index: 12, kind: input, shape index: {}]   ;;  %s3023_s13 = inlined_call_operand.vmem [shape: f32[1,32], index: 13, kind: input, shape index: {}]   ;;  %s3024_s14 = inlined_call_operand.vmem [shape: f32[1,32], index: 14, kind: input, shape index: {}]   ;;  %s3025_s15 = inlined_call_operand.vmem [shape: f32[1,32], index: 15, kind: input, shape index: {}]   ;;  %s3026_s16 = inlined_call_operand.hbm [shape: f32[2,8,32], index: 16, kind: output, shape index: {}]  }
   0x1   :  { %3034 = sst [smem:[#allocation19_spill]] %s3010_s0 }
   0x2   :  { %3035 = sst [smem:[#allocation20_spill]] %s3016_s6 }
   0x3   :  { %3036 = sst [smem:[#allocation21_spill]] %s3019_s9 }
   0x4   :  { %3037 = sst [smem:[#allocation22_spill]] %s3020_s10 }
   0x5   :  { %3038 = sst [smem:[#allocation23_spill]] %s3021_s11 }
   0x6   :  { %3039 = sst [smem:[#allocation24_spill]] %s3023_s13 }
   0x7   :  { %3040 = sst [smem:[#allocation25_spill]] %s3024_s14 }
   0x8   :  { %3041 = sst [smem:[#allocation26_spill]] %s3025_s15 }
   0x9   :  { %3042 = sst [smem:[#allocation27_spill]] %s3026_s16 }
   0xa   :  { %21 = vsyncpa [#allocation4], 0 }
   0xb   :  { %23 = vsyncpa [#allocation4 + $0x1], 0 }
   0xc   :  { %24 = vsyncpa [#allocation7], 0 }
   0xd   :  { %25 = vsyncpa [#allocation10], 0 }
   0xe   :  { %26 = vsyncpa [#allocation5], 0 }
   0xf   :  { %28 = vsyncpa [#allocation5 + $0x1], 0  ;;  %s2628_s21 = smov 0   ;;  %s2630_s22 = smov 0  }
  0x10   :  { %s2632_s23 = smov 0   ;;  %s2634_s24 = smov 0  }
  0x11   :  { %s2636_s25 = smov 0   ;;  %s2638_s26 = smov 0  }
  0x12 LB: > { %3043 = sst [smem:[#allocation16_spill]] %s2502_s21  ;;  %s1999_s27 = sadd.s32 4294967295, %s2522_s26   ;;  %s2522_s26 = sphi %s2638_s26, %s34_s26   ;;  %s2518_s25 = sphi %s2636_s25, %s3074_s25   ;;  %s2514_s24 = sphi %s2634_s24, %s3073_s24   ;;  %s2510_s23 = sphi %s2632_s23, %s3072_s23   ;;  %s2506_s22 = sphi %s2630_s22, %s3071_s22   ;;  %s2502_s21 = sphi %s2628_s21, %s3070_s21  }
  0x13   : > { %s2000_s28 = sadd.s32 4294967294, %s2522_s26   ;;  %p94_p0 = scmp.ne.s32.totalorder %s2506_s22, %s2502_s21 }
  0x14   : > { %p2662_p1 = scmp.eq.s32.totalorder %s1999_s27, 0  ;;  %p2666_p2 = scmp.eq.s32.totalorder %s1999_s27, 1 }
  0x15   : > { %p420_p3 = scmp.eq.s32.totalorder %s2000_s28, 1  ;;  %p2001_p5 = scmp.ge.s32.totalorder %s2522_s26, 1 }
  0x16   : > { %s3044_s29 = scalar_select %p2662_p1, 1, 0 }
  0x17   : > { %p2672_p4 = por %p2662_p1, %p94_p0  ;;  %p2677_p6 = por %p420_p3, %p94_p0 }
  0x18   : > { %p427_p7 = scmp.lt.s32.totalorder %s2522_s26, 3  ;;  %s2524_s19 = smov [#allocation6]  }
  0x19   : > { %s3046_s0 = scalar_select %p2672_p4, 1, 0 }
  0x1a   : > { %s3047_s17 = scalar_select %p2677_p6, 1, 0 }
  0x1b   : > { %p2682_p8 = pnand %p2001_p5, %p427_p7  ;;  %s451_s20 = sshll.u32 %s2524_s19, 4  ;;  %s452_s20 = int_to_ptr.vmem [resolvable:$true] %s451_s20 }
  0x1c   : > { %3048 = sst [smem:[#allocation17_spill]] %s3047_s17  ;;  %s2525_s28 = smov [#allocation8]  }
  0x1d   : > { %p2204_p9 = pneg %p2682_p8  ;;  %s473_s17 = sshll.u32 %s2525_s28, 4  ;;  %s474_s17 = int_to_ptr.vmem [resolvable:$true] %s473_s17 }
  0x1e   : > { %s2526_s21 = smov [#allocation9]   ;;  %s2339_s15 = scalar_lea.vmem %s452_s20, 256 }
  0x1f   : > { %p2691_p11 = pnand %p2204_p9, %p2662_p1  ;;  %s487_s16 = sshll.u32 %s2526_s21, 4  ;;  %s488_s16 = int_to_ptr.vmem [resolvable:$true] %s487_s16 }
  0x20   : > { %p2340_p13 = scmp.ne.s32.totalorder %s452_s20, %s2339_s15  ;;  %p2347_p5 = scmp.lt.s32.totalorder %s452_s20, %s452_s20 }
  0x21   : > { %p2330_p12 = pneg %p2691_p11  ;;  %p2348_p7 = scmp.lt.s32.totalorder %s2339_s15, %s2339_s15 }
  0x23   : > { %p2342_p0 = pnand %p2340_p13, %p2330_p12  ;;  %p2349_p9 = por %p2348_p7, %p2347_p5 }
  0x25   : > { %p2343_p3 = pneg %p2342_p0 }
  0x27   : > { %p2350_p10 = pnand %p2349_p9, %p2343_p3 }
  0x29   : > { %2353 = shalt.err (!%p2350_p10)
}
  0x2a   : > { %s2527_s19 = smov 64   ;;  %s2528_s28 = smov 4  }
  0x2b   : > { %s3051_s6 = sld [smem:[#allocation20_spill]]  ;;  %s2365_s13 = scalar_lea.vmem %s474_s17, 256 }
  0x2c   : > { %p2366_p6 = scmp.ne.s32.totalorder %s474_s17, %s2365_s13  ;;  %p2373_p1 = scmp.lt.s32.totalorder %s474_s17, %s474_s17 }
  0x2d   : > { %p2374_p4 = scmp.lt.s32.totalorder %s2365_s13, %s2365_s13 }
  0x2e   : > { %p2368_p13 = pnand %p2366_p6, %p2330_p12 }
  0x2f   : > { %p2375_p5 = por %p2374_p4, %p2373_p1 }
  0x30   : > { %p2369_p0 = pneg %p2368_p13 }
  0x31   : > { %2207 = dma.hbm_to_vmem [thread:$0]  (!%p2691_p11), %s3051_s6, 256, %s452_s20, [#allocation7], %s2527_s19, %s2527_s19, %s2528_s28  }
  0x32   : > { %p2376_p3 = pnand %p2375_p5, %p2369_p0 }
  0x34   : > { %2379 = shalt.err (!%p2376_p3)
}
  0x35   : > { %s3052_s10 = sld [smem:[#allocation22_spill]]  ;;  %s2391_s14 = scalar_lea.vmem %s488_s16, 16 }
  0x36   : > { %p2392_p10 = scmp.ne.s32.totalorder %s488_s16, %s2391_s14  ;;  %s2398_s20 = scalar_lea.vmem %s488_s16, 32 }
  0x37   : > { %p2399_p9 = scmp.lt.s32.totalorder %s488_s16, %s488_s16  ;;  %p2400_p13 = scmp.lt.s32.totalorder %s2398_s20, %s2391_s14 }
  0x38   : > { %p2394_p7 = pnand %p2392_p10, %p2330_p12 }
  0x39   : > { %p2401_p1 = por %p2400_p13, %p2399_p9 }
  0x3a   : > { %p2395_p6 = pneg %p2394_p7 }
  0x3b   : > { %2210 = dma.hbm_to_vmem [thread:$0]  (!%p2691_p11), %s3052_s10, 256, %s474_s17, [#allocation7], %s2527_s19, %s2527_s19, %s2528_s28  }
  0x3c   : > { %p2402_p4 = pnand %p2401_p1, %p2395_p6 }
  0x3e   : > { %2405 = shalt.err (!%p2402_p4)
}
  0x3f   : > { %s3053_s11 = sld [smem:[#allocation23_spill]]  ;;  %s81_s9 = sadd.s32 1, %s2510_s23 }
  0x40   : > { %s46_s17 = sadd.s32 1, %s2518_s25  ;;  %p88_p12 = scmp.ne.s32.totalorder %s2510_s23, %s2506_s22 }
  0x41   : > { %p48_p0 = scmp.ge.s32.totalorder %s46_s17, 2  ;;  %p89_p5 = scmp.eq.s32.totalorder %s2522_s26, 0 }
  0x42   : > { %p2728_p3 = por %p2666_p2, %p88_p12  ;;  %p2225_p10 = scmp.lt.s32.totalorder %s2522_s26, 2 }
  0x43   : > { %s3076_s17 = smov (%p48_p0, %s46_s17), 0  ;;  %p90_p7 = por %p89_p5, %p88_p12 }
  0x44   : > { %3055 = sst [smem:[#allocation18_spill]] %s3076_s17  ;;  %s520_s19 = sand.u32 1, %s2510_s23  }
  0x45   : > { %2213 = dma.hbm_to_vmem [thread:$0]  (!%p2691_p11), %s3053_s11, 16, %s488_s16, [#allocation10]  }
  0x46   : > { %s78_s28 = ssub.s32 %s2518_s25, %s3076_s17  ;;  %s2006_s16 = sshll.u32 %s520_s19, 2 }
  0x47   : > { %p79_p6 = scmp.eq.s32.totalorder %s78_s28, 0  ;;  %s2007_s15 = sshll.u32 %s2518_s25, 6 }
  0x48   : > { %s529_s30 = scalar_lea.hbm %s3011_s1, %s2007_s15  ;;  %s524_s21 = scalar_lea.vmem [#allocation3], %s2006_s16 }
  0x49   : > { %s2740_s14 = scalar_select %p79_p6, %s2510_s23, %s81_s9  }
  0x4a   : > { %s531_s6 = sshll.u32 %s524_s21, 4  ;;  %p2747_p2 = pnand %p2225_p10, %p90_p7  ;;  %s532_s6 = int_to_ptr.vmem [resolvable:$true] %s531_s6 }
  0x4b   : > { %s521_s11 = scalar_lea.sflag [#allocation4], %s520_s19  ;;  %s2419_s28 = scalar_lea.vmem %s532_s6, 64 }
  0x4c   : > { %p2408_p11 = pneg %p2747_p2  ;;  %p2420_p9 = scmp.ne.s32.totalorder %s532_s6, %s2419_s28 }
  0x4d   : > { %s2529_s9 = smov [#allocation3]  }
  0x4e   : > { %p2422_p13 = pnand %p2420_p9, %p2408_p11  ;;  %s2424_s17 = sshll.u32 %s2529_s9, 4  ;;  %s2425_s17 = int_to_ptr.vmem [resolvable:$false] %s2424_s17 }
  0x4f   : > { %s2426_s15 = scalar_lea.vmem %s2425_s17, 128  ;;  %p2427_p4 = scmp.lt.s32.totalorder %s532_s6, %s2425_s17 }
  0x50   : > { %p2423_p1 = pneg %p2422_p13  ;;  %p2428_p12 = scmp.lt.s32.totalorder %s2426_s15, %s2419_s28 }
  0x52   : > { %p2429_p0 = por %p2428_p12, %p2427_p4 }
  0x54   : > { %p2430_p5 = pnand %p2429_p0, %p2423_p1 }
  0x56   : > { %2433 = shalt.err (!%p2430_p5)
}
  0x57   : > { %2217 = dma.hbm_to_vmem [thread:$0]  (!%p2747_p2), %s529_s30, 64, %s532_s6, %s521_s11  }
  0x58   : > { %540 = sbr.rel (%p2682_p8) target bundleno = 2453 (0x995), region = 84  ;;  %s2758_s19 = sand.u32 (!%p2682_p8), 1, %s2506_s22  }
  0x59   : > { %s2009_s16 = sshll.u32 (!%p2682_p8), %s2758_s19, 2  ;;  %s543_s20 = scalar_lea.sflag (!%p2682_p8), [#allocation4], %s2758_s19 }
  0x5a   : > { %s546_s13 = scalar_lea.vmem (!%p2682_p8), [#allocation3], %s2009_s16  ;;  %p3057_p10 = scmp.ne.s32.totalorder (!%p2682_p8), %s3046_s0, 0 }
  0x5d   : > { %2485 = dma.done.wait (%p3057_p10), %s543_s20, 64  }
  0x5e   : > { %2487 = vsyncadd (%p3057_p10), %s543_s20, 4294967232  ;;  %p3058_p7 = scmp.ne.s32.totalorder %s3044_s29, 0 }
  0x60   : > { %2489 = dma.done.wait (%p3058_p7), [#allocation7], 512  }
  0x61   : > { %2491 = vsyncadd (%p3058_p7), [#allocation7], 4294966784 }
  0x62   : > { %2493 = dma.done.wait (%p3058_p7), [#allocation10], 16  }
  0x63   : > { %2495 = vsyncadd (%p3058_p7), [#allocation10], 4294967280  ;;  %v2530_v0 = vmov 0.0   ;;  %vm2531_vm0 = vmmov 0   ;;  %p614_p8 = scmp.lt.s32.totalorder %s2514_s24, 1  ;;  %v2295_v1 = vld [vmem:[%s3014_s4 + $0x8] sm:$0xff]   ;;  %v781_v24 = vlaneseq }
  0x64   : > { %2096 = vmatprep.subr.bf16.mxu1 %v2530_v0  ;;  %2100 = vmatprep.mubr.msk.bf16.mxu1 %vm2531_vm0, %v2530_v0  ;;  %v2296_v2 = vld [vmem:[%s3014_s4] sm:$0xff]   ;;  %vm650_vm1 = vcmask 261120   ;;  %v2297_v4 = vld [vmem:[%s3012_s2 + $0x8] sm:$0xff]   ;;  %s3059_s9 = sld [smem:[#allocation19_spill]]  ;;  %vm695_vm2 = vcmask 519168   ;;  %s2532_s29 = smov 104  }
  0x65   : > { %2112 = vmatprep.subr.bf16.mxu0 %v2530_v0  ;;  %2114 = vmatprep.mubr.msk.bf16.mxu0 %vm2531_vm0, %v2530_v0  ;;  %s615_s11 = scalar_select %p614_p8, %s2514_s24, 1  ;;  %v626_v3 = vld [vmem:[%s546_s13] sm:$0xf]  ;;  %v2015_v8 = vld [vmem:[%s3015_s5] ss:$0 sm:$0xff]  ;;  %v782_v31 = vshrl.u32 %v781_v24, 7 }
  0x66   : > { %2097 = vmatpush3.bf16.msra.mxu1 %v2295_v1  ;;  %v2298_v5 = vld [vmem:[%s3012_s2] sm:$0xff]   ;;  %s2533_s0 = smov 120   ;;  %s2534_s18 = smov 112   ;;  %v2535_v22 = vmov 1983009808   ;;  %vm993_vm3 = vcmask 1043456  }
  0x67   : > { %2098 = vmatprep.subr.bf16.mxu1 %v2530_v0  ;;  %s2014_s30 = sshll.u32 %s615_s11, 3  ;;  %v2019_v16 = vld [vmem:[%s3013_s3] ss:$0 sm:$0xff]  ;;  %v779_v23 = vunpack.c.l.s4 %v2535_v22  ;;  %v2536_v27 = vmov 1934713408   ;;  %s2537_s17 = smov 96  }
  0x68   : > { %v811_v28 = vunpack.c.l.s4 %v2536_v27  ;;  %vm989_vm4 = vcmask 64512   ;;  %s2540_s21 = smov 8   ;;  %s2541_s28 = smov 24   ;;  %vm1576_vm5 = vcmask 130048   ;;  %vm1578_vm6 = vcmask 195584  }
  0x69   : > { %v780_v30 = vunpack.c.0.s8 %v779_v23  ;;  %vm1786_vm7 = vcmask 523264   ;;  %s3061_s16 = sld [smem:[#allocation24_spill]]  ;;  %s2013_s20 = sshll.u32 %s2758_s19, 3 }
  0x6a   : > { %2099 = vmatpush3.bf16.msra.mxu1 %v2296_v2  ;;  %s620_s15 = scalar_lea.vmem %s3059_s9, %s2014_s30  ;;  %v812_v34 = vunpack.c.0.s8 %v811_v28  ;;  %s2539_s30 = smov 16  }
  0x6b   : > { %2104 = vmatprep.subr.bf16.mxu1 %v2530_v0  ;;  %v2802_v6 = vld [vmem:[%s620_s15] sm:$0xff]  ;;  %v2826_v35 = vsub.s32 %v780_v30, %v782_v31  ;;  %s3062_s10 = sld [smem:[#allocation25_spill]]  ;;  %s2542_s6 = smov [#allocation11]  }
  0x6c   : > { %v698_v7 = vpack.c.bf16 %v2802_v6, %v2802_v6  ;;  %v2829_v42 = vsub.s32 %v812_v34, %v782_v31  ;;  %s3064_s9 = sld [smem:[#allocation27_spill]] }
  0x6d   : > { %2101 = vmatmul.mubr.msk.bf16.vlgmr.msra.gmra.mxu1 %vm650_vm1, %v626_v3 }
  0x6e   : > { %2105 = vmatpush3.bf16.msra.mxu1 %v2297_v4  ;;  %2108 = vmatprep.mubr.msk.bf16.mxu1 %vm2531_vm0, %v2530_v0 }
  0x6f   : > { %2106 = vmatprep.subr.bf16.mxu1 %v2530_v0 }
  0x72   : > { %2107 = vmatpush3.bf16.msra.mxu1 %v2298_v5 }
  0x73   : > { %2118 = vmatprep.subr.bf16.mxu1 %v2530_v0 }
  0x75   : > { %2109 = vmatmul.mubr.msk.bf16.vlgmr.msra.gmra.mxu1 %vm650_vm1, %v698_v7 }
  0x76   : > { %2120 = vmatprep.mubr.msk.bf16.mxu1 %vm2531_vm0, %v2530_v0 }
 0x12d   : > { %v688_v9 = vpop.f32.mrf.mxu1 }
 0x12e   : > { %v689_v10 = vadd.f32 %v2015_v8, %v688_v9 }
 0x12f   : > { %v2102_v11 = vpop.f32.mrf.mxu1 }
 0x130   : > { %v694_v12 = vpack.c.bf16 %v689_v10, %v689_v10  ;;  %v2538_v11 = vmov 0  }
 0x131   : > { %v691_v13 = vpop.f32.mrf.mxu1 }
 0x132   : > { %696 = vst.msk [vmem:[#allocation2] sm:$0xf] %vm695_vm2, %v694_v12 }
 0x133   : > { %v2103_v14 = vpop.f32.mrf.mxu1 }
 0x135   : > { %v760_v15 = vpop.f32.mrf.mxu1 }
 0x136   : > { %v761_v20 = vadd.f32 %v2019_v16, %v760_v15 }
 0x137   : > { %v2110_v17 = vpop.f32.mrf.mxu1 }
 0x139   : > { %v852_v18 = vld [vmem:[#allocation2] sm:$0xf]  ;;  %v763_v19 = vpop.f32.mrf.mxu1 }
 0x13a   : > { %860 = vrot.lane.b32.xlu1 %v852_v18, %s2532_s29  ;;  %854 = vrot.lane.b32.xlu0 %v852_v18, %s2533_s0  ;;  %v2031_v29 = vcombine.low %v852_v18, %v852_v18 }
 0x13b   : > { %v2111_v21 = vpop.f32.mrf.mxu1 }
 0x13e   : > { %857 = vrot.lane.b32.xlu0 %v852_v18, %s2534_s18  ;;  %767 = vrot.lane.b32.xlu1 %v761_v20, %s2533_s0  ;;  %s3063_s0 = sld [smem:[#allocation26_spill]] }
 0x142   : > { %770 = vrot.lane.b32.xlu0 %v761_v20, %s2534_s18  ;;  %773 = vrot.lane.b32.xlu1 %v761_v20, %s2532_s29  ;;  %s3060_s18 = sld [smem:[#allocation21_spill]] }
 0x160   : > { %925 = vxpose.xlu0.c.b16.start.end [1/1] (short) (narrow) %v852_v18, 16 }
 0x1ac   : > { %v2817_v25 = vpop.permute.xlu1 %860  ;;  %v2819_v26 = vpop.permute.xlu0 %854 }
 0x1ad   : > { %941 = vxpose.xlu1.c.b16.start.end [1/1] (short) (narrow) %v2819_v26, 16 }
 0x1b0   : > { %v2822_v32 = vpop.permute.xlu0 %857  ;;  %v768_v33 = vpop.permute.xlu1 %767 }
 0x1b1   : > { %957 = vxpose.xlu0.c.b16.start.end [1/1] (short) (narrow) %v2822_v32, 16  ;;  %1221 = vrot.lane.b32.xlu1 %v2031_v29, %s2537_s17 }
 0x1b4   : > { %v771_v36 = vpop.permute.xlu0 %770  ;;  %v774_v37 = vpop.permute.xlu1 %773 }
 0x1b5   : > { %v776_v38 = vcombine.low %v761_v20, %v771_v36  ;;  %v777_v39 = vcombine.high %v761_v20, %v771_v36  ;;  %v792_v40 = vcombine.low %v768_v33, %v774_v37  ;;  %v793_v41 = vcombine.high %v768_v33, %v774_v37  ;;  %973 = vxpose.xlu0.c.b16.start.end [1/1] (short) (narrow) %v2817_v25, 16 }
 0x1b7   : > { %v784_v43 = vrot.slane %v776_v38, %v2826_v35  ;;  %v791_v44 = vrot.slane %v777_v39, %v2826_v35  ;;  %v800_v45 = vrot.slane %v792_v40, %v2826_v35  ;;  %v807_v46 = vrot.slane %v793_v41, %v2826_v35 }
 0x1b9   : > { %v808_v47 = vcombine.low %v784_v43, %v800_v45  ;;  %v809_v48 = vcombine.high %v784_v43, %v800_v45  ;;  %v824_v49 = vcombine.low %v791_v44, %v807_v46  ;;  %v825_v50 = vcombine.high %v791_v44, %v807_v46 }
 0x1bb   : > { %v816_v51 = vrot.slane %v808_v47, %v2829_v42  ;;  %v823_v52 = vrot.slane %v809_v48, %v2829_v42  ;;  %v832_v53 = vrot.slane %v824_v49, %v2829_v42  ;;  %v839_v54 = vrot.slane %v825_v50, %v2829_v42 }
 0x1bd   : > { %v840_v55 = vcombine.high %v816_v51, %v2530_v0  ;;  %v841_v56 = vcombine.high %v823_v52, %v2530_v0  ;;  %v842_v57 = vcombine.high %v832_v53, %v2530_v0  ;;  %v843_v58 = vcombine.high %v839_v54, %v2530_v0 }
 0x1be   : > { %v2023_v59 = vpack.c.bf16 %v832_v53, %v816_v51  ;;  %v2024_v60 = vpack.c.bf16 %v839_v54, %v823_v52 }
 0x1bf   : > { %v2025_v61 = vpack.c.bf16 %v842_v57, %v840_v55  ;;  %v2026_v62 = vpack.c.bf16 %v843_v58, %v841_v56 }
 0x1c0   : > { %v870_v63 = vrot.slane %v2023_v59, %v2826_v35  ;;  %v878_v1 = vrot.slane %v2024_v60, %v2826_v35  ;;  %v2035_v59 = vcombine.low %v2822_v32, %v2822_v32  ;;  %v2037_v60 = vcombine.low %v2817_v25, %v2817_v25 }
 0x1c1   : > { %v895_v2 = vrot.slane %v2025_v61, %v2826_v35  ;;  %v903_v3 = vrot.slane %v2026_v62, %v2826_v35  ;;  %v2033_v61 = vcombine.low %v2819_v26, %v2819_v26 }
 0x1c2   : > { %v879_v4 = vcombine.low %v870_v63, %v878_v1  ;;  %v933_v5 = vpop.trf.xlu0 }
 0x1c3   : > { %v995_v7 = vsel %vm993_vm3, %v933_v5, 0  ;;  %v904_v8 = vcombine.low %v895_v2, %v903_v3 }
 0x1c4   : > { %2113 = vmatpush3.bf16.msra.mxu0 %v995_v7  ;;  %v886_v9 = vrot.slane %v879_v4, %v2829_v42 }
 0x1c5   : > { %v911_v10 = vrot.slane %v904_v8, %v2829_v42  ;;  %2124 = vmatprep.subr.bf16.mxu0 %v2530_v0 }
 0x1c6   : > { %v887_v12 = vcombine.high %v886_v9, %v2538_v11  ;;  %v916_v14 = vshrl.u32 %v886_v9, 16 }
 0x1c7   : > { %v915_v13 = vpack.i.b16 %v911_v10, %v886_v9  ;;  %v917_v15 = vshrl.u32 %v911_v10, 16  ;;  %v912_v16 = vcombine.high %v911_v10, %v2538_v11 }
 0x1c8   : > { %v922_v19 = vshrl.u32 %v887_v12, 16 }
 0x1c9   : > { %2115 = vmatmul.mubr.msk.bf16.vlgmr.msra.gmra.mxu0 %vm989_vm4, %v915_v13  ;;  %v918_v17 = vpack.i.b16 %v917_v15, %v916_v14  ;;  %v921_v18 = vpack.i.b16 %v912_v16, %v887_v12  ;;  %v923_v20 = vshrl.u32 %v912_v16, 16 }
 0x1ca   : > { %2126 = vmatprep.mubr.msk.bf16.mxu0 %vm2531_vm0, %v2530_v0 }
 0x1cb   : > { %v924_v21 = vpack.i.b16 %v923_v20, %v922_v19 }
 0x20f   : > { %v949_v22 = vpop.trf.xlu1 }
 0x210   : > { %v1041_v23 = vsel %vm993_vm3, %v949_v22, 0 }
 0x211   : > { %2119 = vmatpush3.bf16.msra.mxu1 %v1041_v23 }
 0x212   : > { %2130 = vmatprep.subr.bf16.mxu1 %v2530_v0 }
 0x213   : > { %v965_v24 = vpop.trf.xlu0 }
 0x214   : > { %v1087_v27 = vsel %vm993_vm3, %v965_v24, 0  ;;  %2121 = vmatmul.mubr.msk.bf16.vlgmr.msra.gmra.mxu1 %vm989_vm4, %v918_v17 }
 0x215   : > { %2125 = vmatpush3.bf16.msra.mxu0 %v1087_v27  ;;  %2132 = vmatprep.mubr.msk.bf16.mxu1 %vm2531_vm0, %v2530_v0 }
 0x216   : > { %2136 = vmatprep.subr.bf16.mxu0 %v2530_v0 }
 0x217   : > { %v981_v28 = vpop.trf.xlu0 }
 0x218   : > { %v1133_v29 = vsel %vm993_vm3, %v981_v28, 0  ;;  %2127 = vmatmul.mubr.msk.bf16.vlgmr.msra.gmra.mxu0 %vm989_vm4, %v921_v18 }
 0x219   : > { %2131 = vmatpush3.bf16.msra.mxu1 %v1133_v29  ;;  %2138 = vmatprep.mubr.msk.bf16.mxu0 %vm2531_vm0, %v2530_v0 }
 0x21a   : > { %2142 = vmatprep.subr.bf16.mxu1 %v2530_v0 }
 0x21c   : > { %2133 = vmatmul.mubr.msk.bf16.vlgmr.msra.gmra.mxu1 %vm989_vm4, %v924_v21 }
 0x21d   : > { %2144 = vmatprep.mubr.msk.bf16.mxu1 %vm2531_vm0, %v2530_v0 }
 0x223   : > { %v1222_v30 = vpop.permute.xlu1 %1221 }
 0x224   : > { %v1227_v31 = vsel %vm993_vm3, %v1222_v30, 0 }
 0x225   : > { %2137 = vmatpush3.bf16.msra.mxu0 %v1227_v31 }
 0x226   : > { %2148 = vmatprep.subr.bf16.mxu0 %v2530_v0 }
 0x289   : > { %v1031_v33 = vpop.f32.mrf.mxu0 }
 0x28a   : > { %v1175_v34 = vmul.f32 0.35355338, %v1031_v33 }
 0x28b   : > { %v2116_v36 = vpop.f32.mrf.mxu0 }
 0x28c   : > { %v1179_v37 = vsel %vm989_vm4, %v1175_v34, -inf }
 0x28d   : > { %1180 = vmax.xlane.f32.xlu1 %v1179_v37  ;;  %v1034_v38 = vpop.f32.mrf.mxu0 }
 0x28f   : > { %v2117_v39 = vpop.f32.mrf.mxu0 }
 0x2d4   : > { %v1077_v40 = vpop.f32.mrf.mxu1 }
 0x2d5   : > { %v1176_v41 = vmul.f32 0.35355338, %v1077_v40 }
 0x2d6   : > { %v2122_v43 = vpop.f32.mrf.mxu1 }
 0x2d7   : > { %v1182_v44 = vsel %vm989_vm4, %v1176_v41, -inf }
 0x2d8   : > { %v1123_v45 = vpop.f32.mrf.mxu0  ;;  %1183 = vmax.xlane.f32.xlu0 %v1182_v44  ;;  %v1080_v46 = vpop.f32.mrf.mxu1 }
 0x2d9   : > { %v1177_v47 = vmul.f32 0.35355338, %v1123_v45 }
 0x2da   : > { %v2123_v48 = vpop.f32.mrf.mxu1  ;;  %v2128_v49 = vpop.f32.mrf.mxu0 }
 0x2db   : > { %v1185_v50 = vsel %vm989_vm4, %v1177_v47, -inf }
 0x2dc   : > { %1186 = vmax.xlane.f32.xlu1 %v1185_v50  ;;  %v1126_v51 = vpop.f32.mrf.mxu0  ;;  %v1169_v52 = vpop.f32.mrf.mxu1 }
 0x2dd   : > { %v1178_v53 = vmul.f32 0.35355338, %v1169_v52 }
 0x2de   : > { %v2129_v54 = vpop.f32.mrf.mxu0  ;;  %v2134_v55 = vpop.f32.mrf.mxu1 }
 0x2df   : > { %v1188_v56 = vsel %vm989_vm4, %v1178_v53, -inf }
 0x2e0   : > { %1189 = vmax.xlane.f32.xlu0 %v1188_v56  ;;  %v1172_v57 = vpop.f32.mrf.mxu1 }
 0x2e2   : > { %v2135_v58 = vpop.f32.mrf.mxu1 }
 0x2ed   : > { %1321 = vrot.lane.b32.xlu1 %v2035_v59, %s2537_s17 }
 0x2f1   : > { %1371 = vrot.lane.b32.xlu1 %v2037_v60, %s2537_s17 }
 0x2f6   : > { %1271 = vrot.lane.b32.xlu0 %v2033_v61, %s2537_s17  ;;  %s613_s17 = scalar_lea.vmem [#allocation11], %s2013_s20 }
 0x316   : > { %v1181_v62 = vpop.xlane.xlu1 %1180 }
 0x317   : > { %v1191_v63 = vsub.f32 %v1175_v34, %v1181_v62 }
 0x319   : > { %v1195_v1 = vmul.f32 1.442695, %v1191_v63 }
 0x31b   : > { %2308 = vpow2.f32 %v1195_v1 }
 0x328   : > { %v2309_v2 = vpop.eup %2308 }
 0x329   : > { %v1203_v3 = vsel %vm989_vm4, %v2309_v2, 0.0  ;;  %v1215_v32 = vpack.c.bf16 %v2309_v2, %v2309_v2 }
 0x32a   : > { %1204 = vadd.xlane.f32.xlu0 %v1203_v3 }
 0x32b   : > { %2139 = vmatmul.mubr.msk.bf16.vlgmr.msra.gmra.mxu0 %vm989_vm4, %v1215_v32 }
 0x32c   : > { %2150 = vmatprep.mubr.msk.bf16.mxu0 %vm2531_vm0, %v2530_v0 }
 0x361   : > { %v1184_v25 = vpop.xlane.xlu0 %1183 }
 0x362   : > { %v1192_v4 = vsub.f32 %v1176_v41, %v1184_v25 }
 0x364   : > { %v1197_v5 = vmul.f32 1.442695, %v1192_v4 }
 0x365   : > { %v1187_v26 = vpop.xlane.xlu1 %1186 }
 0x366   : > { %2310 = vpow2.f32 %v1197_v5  ;;  %v1193_v7 = vsub.f32 %v1177_v47, %v1187_v26 }
 0x368   : > { %v1199_v8 = vmul.f32 1.442695, %v1193_v7  ;;  %v2300_v7 = vld [vmem:[#allocation6 + $0x8] sm:$0xff]  }
 0x369   : > { %v1322_v9 = vpop.permute.xlu1 %1321  ;;  %v1190_v10 = vpop.xlane.xlu0 %1189 }
 0x36a   : > { %2312 = vpow2.f32 %v1199_v8  ;;  %v1327_v11 = vsel %vm993_vm3, %v1322_v9, 0  ;;  %v1194_v12 = vsub.f32 %v1178_v53, %v1190_v10 }
 0x36b   : > { %2149 = vmatpush3.bf16.msra.mxu0 %v1327_v11 }
 0x36c   : > { %v1201_v13 = vmul.f32 1.442695, %v1194_v12  ;;  %2160 = vmatprep.subr.bf16.mxu0 %v2530_v0 }
 0x36d   : > { %v1272_v14 = vpop.permute.xlu0 %1271  ;;  %v1372_v17 = vpop.permute.xlu1 %1371 }
 0x36e   : > { %2314 = vpow2.f32 %v1201_v13  ;;  %v1277_v15 = vsel %vm993_vm3, %v1272_v14, 0  ;;  %v1377_v20 = vsel %vm993_vm3, %v1372_v17, 0 }
 0x36f   : > { %2143 = vmatpush3.bf16.msra.mxu1 %v1277_v15 }
 0x370   : > { %2154 = vmatprep.subr.bf16.mxu1 %v2530_v0 }
 0x373   : > { %v2311_v16 = vpop.eup %2310 }
 0x374   : > { %v1206_v18 = vsel %vm989_vm4, %v2311_v16, 0.0  ;;  %v1216_v19 = vpack.c.bf16 %v2311_v16, %v2311_v16  ;;  %v2301_v16 = vld [vmem:[#allocation6] sm:$0xff]  }
 0x375   : > { %1207 = vadd.xlane.f32.xlu1 %v1206_v18 }
 0x376   : > { %2145 = vmatmul.mubr.msk.bf16.vlgmr.msra.gmra.mxu1 %vm989_vm4, %v1216_v19 }
 0x377   : > { %v2313_v21 = vpop.eup %2312  ;;  %2155 = vmatpush3.bf16.msra.mxu1 %v1377_v20  ;;  %2156 = vmatprep.mubr.msk.bf16.mxu1 %vm2531_vm0, %v2530_v0 }
 0x378   : > { %v1209_v22 = vsel %vm989_vm4, %v2313_v21, 0.0  ;;  %v1217_v23 = vpack.c.bf16 %v2313_v21, %v2313_v21  ;;  %2168 = vmatprep.subr.bf16.mxu1 %v2530_v0 }
 0x379   : > { %1210 = vadd.xlane.f32.xlu0 %v1209_v22 }
 0x37a   : > { %2151 = vmatmul.mubr.msk.bf16.vlgmr.msra.gmra.mxu0 %vm989_vm4, %v1217_v23 }
 0x37b   : > { %v2315_v24 = vpop.eup %2314  ;;  %2164 = vmatprep.mubr.msk.bf16.mxu0 %vm2531_vm0, %v2530_v0  ;;  %2161 = vmatpush3.bf16.msra.mxu0 %v2300_v7 }
 0x37c   : > { %v1212_v27 = vsel %vm989_vm4, %v2315_v24, 0.0  ;;  %v1218_v28 = vpack.c.bf16 %v2315_v24, %v2315_v24  ;;  %2162 = vmatprep.subr.bf16.mxu0 %v2530_v0 }
 0x37d   : > { %1213 = vadd.xlane.f32.xlu0 %v1212_v27 }
 0x37e   : > { %2157 = vmatmul.mubr.msk.bf16.vlgmr.msra.gmra.mxu1 %vm989_vm4, %v1218_v28 }
 0x37f   : > { %2172 = vmatprep.mubr.msk.bf16.mxu1 %vm2531_vm0, %v2530_v0  ;;  %2163 = vmatpush3.bf16.msra.mxu0 %v2301_v16 }
 0x380   : > { %2176 = vmatprep.subr.bf16.mxu0 %v2530_v0 }
 0x3b3   : > { %v1205_v34 = vpop.xlane.xlu0 %1204 }
 0x3eb   : > { %v1263_v29 = vpop.f32.mrf.mxu0 }
 0x3ed   : > { %v2140_v30 = vpop.f32.mrf.mxu0 }
 0x3ef   : > { %v1266_v31 = vpop.f32.mrf.mxu0 }
 0x3f1   : > { %v2141_v33 = vpop.f32.mrf.mxu0 }
 0x3fe   : > { %v1208_v37 = vpop.xlane.xlu1 %1207 }
 0x402   : > { %v1211_v36 = vpop.xlane.xlu0 %1210 }
 0x403   : > { %2316 = vrcp.f32 %v1211_v36 }
 0x404   : > { %2318 = vrcp.f32 %v1205_v34 }
 0x405   : > { %2320 = vrcp.f32 %v1208_v37 }
 0x406   : > { %v1214_v38 = vpop.xlane.xlu0 %1213 }
 0x407   : > { %2322 = vrcp.f32 %v1214_v38 }
 0x410   : > { %v2317_v41 = vpop.eup %2316 }
 0x411   : > { %v2319_v46 = vpop.eup %2318 }
 0x412   : > { %v2321_v49 = vpop.eup %2320  ;;  %v1423_v50 = vmul.f32 %v2319_v46, %v1263_v29 }
 0x414   : > { %v2323_v51 = vpop.eup %2322 }
 0x436   : > { %v1313_v39 = vpop.f32.mrf.mxu1 }
 0x437   : > { %v1424_v54 = vmul.f32 %v2321_v49, %v1313_v39 }
 0x438   : > { %v2146_v40 = vpop.f32.mrf.mxu1 }
 0x43a   : > { %v1316_v43 = vpop.f32.mrf.mxu1  ;;  %v1363_v44 = vpop.f32.mrf.mxu0 }
 0x43b   : > { %v1425_v45 = vmul.f32 %v2317_v41, %v1363_v44  ;;  %v2041_v43 = vld [vmem:[%s3017_s7] ss:$0 sm:$0xff] }
 0x43c   : > { %v2147_v47 = vpop.f32.mrf.mxu1  ;;  %v2152_v48 = vpop.f32.mrf.mxu0 }
 0x43d   : > { %v1427_v55 = vcombine.low %v1423_v50, %v1425_v45  ;;  %v1428_v56 = vcombine.high %v1423_v50, %v1425_v45 }
 0x43e   : > { %v1366_v52 = vpop.f32.mrf.mxu0  ;;  %v1413_v53 = vpop.f32.mrf.mxu1 }
 0x43f   : > { %v1426_v57 = vmul.f32 %v2323_v51, %v1413_v53  ;;  %v1435_v63 = vrot.slane %v1427_v55, %v2826_v35  ;;  %v1442_v1 = vrot.slane %v1428_v56, %v2826_v35  ;;  %v2302_v56 = vld [vmem:[#allocation8 + $0x8] sm:$0xff]  }
 0x440   : > { %v2153_v58 = vpop.f32.mrf.mxu0  ;;  %v2158_v59 = vpop.f32.mrf.mxu1  ;;  %2169 = vmatpush3.bf16.msra.mxu1 %v2302_v56 }
 0x441   : > { %v1443_v60 = vcombine.low %v1424_v54, %v1426_v57  ;;  %v1444_v61 = vcombine.high %v1424_v54, %v1426_v57  ;;  %v2303_v57 = vld [vmem:[#allocation8] sm:$0xff]   ;;  %2170 = vmatprep.subr.bf16.mxu1 %v2530_v0  ;;  %v2305_v58 = vld [vmem:[%s3022_s12 + $0x10] sm:$0xff]  }
 0x442   : > { %v1416_v62 = vpop.f32.mrf.mxu1 }
 0x443   : > { %v1451_v2 = vrot.slane %v1443_v60, %v2826_v35  ;;  %v1458_v3 = vrot.slane %v1444_v61, %v2826_v35 }
 0x444   : > { %v2159_v32 = vpop.f32.mrf.mxu1  ;;  %2171 = vmatpush3.bf16.msra.mxu1 %v2303_v57 }
 0x445   : > { %v1459_v25 = vcombine.low %v1435_v63, %v1451_v2  ;;  %v1460_v4 = vcombine.high %v1435_v63, %v1451_v2  ;;  %v1475_v5 = vcombine.low %v1442_v1, %v1458_v3  ;;  %v1476_v26 = vcombine.high %v1442_v1, %v1458_v3  ;;  %v2045_v63 = vld [vmem:[%s3018_s8] ss:$0 sm:$0xff] }
 0x446   : > { %v2046_v2 = vld [vmem:[%s3060_s18] ss:$0 sm:$0xff]  ;;  %s2060_s18 = sshll.u32 %s2514_s24, 7 }
 0x447   : > { %v1467_v8 = vrot.slane %v1459_v25, %v2829_v42  ;;  %v1474_v9 = vrot.slane %v1460_v4, %v2829_v42  ;;  %v1483_v10 = vrot.slane %v1475_v5, %v2829_v42  ;;  %v1490_v11 = vrot.slane %v1476_v26, %v2829_v42  ;;  %v2306_v4 = vld [vmem:[%s3022_s12 + $0x8] sm:$0xff]   ;;  %v2307_v5 = vld [vmem:[%s3022_s12] sm:$0xff]   ;;  %s1874_s15 = scalar_lea.hbm %s3064_s9, %s2060_s18 }
 0x448   : > { %v2047_v26 = vld [vmem:[#allocation9] ss:$0 sm:$0xff] }
 0x449   : > { %v1495_v12 = vcombine.low %v1467_v8, %v1474_v9  ;;  %v2039_v13 = vcombine.high %v1467_v8, %v1474_v9  ;;  %v1511_v14 = vcombine.low %v1483_v10, %v1490_v11  ;;  %v2040_v15 = vcombine.high %v1483_v10, %v1490_v11 }
 0x44b   : > { %v1502_v17 = vrot.slane %v1495_v12, %v2826_v35  ;;  %v1510_v18 = vrot.slane %v2039_v13, %v2826_v35  ;;  %v1518_v19 = vrot.slane %v1511_v14, %v2826_v35  ;;  %v1526_v20 = vrot.slane %v2040_v15, %v2826_v35  ;;  %v2051_v14 = vld [vmem:[%s3061_s16] ss:$0 sm:$0xff]  ;;  %s1862_s16 = scalar_lea.sflag [#allocation5], %s2758_s19 }
 0x44d   : > { %v1528_v21 = vcombine.high %v1502_v17, %v1510_v18  ;;  %v1544_v22 = vcombine.high %v1518_v19, %v1526_v20  ;;  %v1527_v23 = vcombine.low %v1502_v17, %v1510_v18  ;;  %v1543_v24 = vcombine.low %v1518_v19, %v1526_v20 }
 0x44f   : > { %v1542_v27 = vrot.slane %v1528_v21, %v2829_v42  ;;  %v1558_v28 = vrot.slane %v1544_v22, %v2829_v42  ;;  %v1535_v29 = vrot.slane %v1527_v23, %v2829_v42  ;;  %v1551_v30 = vrot.slane %v1543_v24, %v2829_v42 }
 0x451   : > { %v1561_v31 = vcombine.low %v1542_v27, %v1558_v28  ;;  %v1560_v33 = vcombine.high %v1535_v29, %v1551_v30  ;;  %v1559_v34 = vcombine.low %v1535_v29, %v1551_v30  ;;  %v1562_v35 = vcombine.high %v1542_v27, %v1558_v28 }
 0x453   : > { %1568 = vrot.lane.b32.xlu0 %v1561_v31, %s2539_s30  ;;  %1564 = vrot.lane.b32.xlu1 %v1560_v33, %s2540_s21  ;;  %v2057_v33 = vld [vmem:[%s3062_s10] ss:$0 sm:$0xff]  ;;  %s1876_s30 = sshll.u32 %s613_s17, 4  ;;  %s2438_s10 = sshll.u32 %s2542_s6, 4  ;;  %s1877_s30 = int_to_ptr.vmem [resolvable:$true] %s1876_s30  ;;  %s2439_s10 = int_to_ptr.vmem [resolvable:$false] %s2438_s10 }
 0x454   : > { %s2434_s13 = scalar_lea.vmem %s1877_s30, 128  ;;  %s2440_s24 = scalar_lea.vmem %s2439_s10, 256 }
 0x455   : > { %p2435_p6 = scmp.ne.s32.totalorder %s1877_s30, %s2434_s13  ;;  %p2441_p9 = scmp.lt.s32.totalorder %s1877_s30, %s2439_s10 }
 0x456   : > { %p2442_p13 = scmp.lt.s32.totalorder %s2440_s24, %s2434_s13 }
 0x457   : > { %1572 = vrot.lane.b32.xlu1 %v1562_v35, %s2541_s28  ;;  %v2058_v35 = vld [vmem:[%s3063_s0] ss:$0 sm:$0xff]  ;;  %p2436_p2 = pnand %p2435_p6, %p2728_p3 }
 0x458   : > { %p2443_p1 = por %p2442_p13, %p2441_p9 }
 0x459   : > { %p2437_p11 = pneg %p2436_p2 }
 0x45b   : > { %p2444_p4 = pnand %p2443_p1, %p2437_p11 }
 0x4c5   : > { %v1565_v36 = vpop.permute.xlu1 %1564  ;;  %v1569_v37 = vpop.permute.xlu0 %1568 }
 0x4c6   : > { %v1575_v38 = vsel %vm989_vm4, %v1559_v34, %v1565_v36 }
 0x4c7   : > { %v1577_v40 = vsel %vm1576_vm5, %v1575_v38, %v1569_v37 }
 0x4c9   : > { %v1573_v39 = vpop.permute.xlu1 %1572 }
 0x4ca   : > { %v1579_v41 = vsel %vm1578_vm6, %v1577_v40, %v1573_v39 }
 0x4cb   : > { %v1580_v42 = vpack.c.bf16 %v1579_v41, %v1579_v41 }
 0x4cd   : > { %2165 = vmatmul.mubr.msk.bf16.vlgmr.msra.gmra.mxu0 %vm650_vm1, %v1580_v42 }
 0x4ce   : > { %2184 = vmatprep.mubr.msk.bf16.mxu0 %vm2531_vm0, %v2530_v0 }
 0x58d   : > { %v1641_v44 = vpop.f32.mrf.mxu0 }
 0x58e   : > { %v1642_v45 = vadd.f32 %v2041_v43, %v1641_v44 }
 0x58f   : > { %v2166_v46 = vpop.f32.mrf.mxu0 }
 0x590   : > { %v1647_v47 = vadd.f32 %v1642_v45, %v2802_v6  ;;  %v2304_v6 = vld [vmem:[%s3022_s12 + $0x18] sm:$0xff]  }
 0x591   : > { %v1644_v48 = vpop.f32.mrf.mxu0  ;;  %2177 = vmatpush3.bf16.msra.mxu0 %v2304_v6 }
 0x592   : > { %v1650_v49 = vsel %vm650_vm1, %v1647_v47, 0.0  ;;  %2178 = vmatprep.subr.bf16.mxu0 %v2530_v0 }
 0x593   : > { %1651 = vadd.xlane.f32.xlu1 %v1650_v49  ;;  %v2167_v50 = vpop.f32.mrf.mxu0 }
 0x595   : > { %2179 = vmatpush3.bf16.msra.mxu0 %v2305_v58 }
 0x596   : > { %2180 = vmatprep.subr.bf16.mxu0 %v2530_v0 }
 0x599   : > { %2181 = vmatpush3.bf16.msra.mxu0 %v2306_v4 }
 0x59a   : > { %2182 = vmatprep.subr.bf16.mxu0 %v2530_v0 }
 0x59d   : > { %2183 = vmatpush3.bf16.msra.mxu0 %v2307_v5 }
 0x61c   : > { %v1652_v51 = vpop.xlane.xlu1 %1651 }
 0x61d   : > { %v1654_v52 = vmul.f32 0.03125, %v1652_v51 }
 0x61f   : > { %v1655_v53 = vsub.f32 %v1647_v47, %v1654_v52 }
 0x621   : > { %v1656_v54 = vmul.f32 %v1655_v53, %v1655_v53 }
 0x623   : > { %v1657_v55 = vsel %vm650_vm1, %v1656_v54, 0.0 }
 0x624   : > { %1658 = vadd.xlane.f32.xlu0 %v1657_v55 }
 0x6ad   : > { %v1659_v59 = vpop.xlane.xlu0 %1658 }
 0x6ae   : > { %v1660_v60 = vmul.f32 0.03125, %v1659_v59 }
 0x6b0   : > { %v1661_v61 = vadd.f32 1e-05, %v1660_v60 }
 0x6b2   : > { %2324 = vrsqrt.f32 %v1661_v61 }
 0x6bf   : > { %v2325_v62 = vpop.eup %2324 }
 0x6c0   : > { %v1663_v1 = vmul.f32 %v2325_v62, %v1655_v53 }
 0x6c2   : > { %v1670_v3 = vmul.f32 %v2045_v63, %v1663_v1 }
 0x6c4   : > { %v1677_v32 = vadd.f32 %v2046_v2, %v1670_v3 }
 0x6c6   : > { %v1678_v25 = vpack.c.bf16 %v1677_v32, %v1677_v32 }
 0x6c8   : > { %2173 = vmatmul.mubr.msk.bf16.vlgmr.msra.gmra.mxu1 %vm650_vm1, %v1678_v25 }
 0x788   : > { %v1739_v7 = vpop.f32.mrf.mxu1 }
 0x789   : > { %v1740_v8 = vadd.f32 %v2047_v26, %v1739_v7 }
 0x78a   : > { %v2174_v9 = vpop.f32.mrf.mxu1 }
 0x78b   : > { %v1745_v10 = vmax.f32 %v1740_v8, 0.0 }
 0x78c   : > { %v1742_v11 = vpop.f32.mrf.mxu1 }
 0x78d   : > { %v1746_v12 = vpack.c.bf16 %v1745_v10, %v1745_v10 }
 0x78e   : > { %v2175_v13 = vpop.f32.mrf.mxu1 }
 0x78f   : > { %2185 = vmatmul.mubr.msk.bf16.vlgmr.msra.gmra.mxu0 %vm1786_vm7, %v1746_v12 }
 0x84f   : > { %v1824_v0 = vpop.f32.mrf.mxu0 }
 0x850   : > { %v1825_v15 = vadd.f32 %v2051_v14, %v1824_v0 }
 0x851   : > { %v2186_v16 = vpop.f32.mrf.mxu0 }
 0x852   : > { %v1830_v17 = vadd.f32 %v1825_v15, %v1677_v32 }
 0x853   : > { %v1827_v18 = vpop.f32.mrf.mxu0 }
 0x854   : > { %v1833_v19 = vsel %vm650_vm1, %v1830_v17, 0.0 }
 0x855   : > { %1834 = vadd.xlane.f32.xlu0 %v1833_v19  ;;  %v2187_v20 = vpop.f32.mrf.mxu0 }
 0x8de   : > { %v1835_v21 = vpop.xlane.xlu0 %1834 }
 0x8df   : > { %v1836_v22 = vmul.f32 0.03125, %v1835_v21 }
 0x8e1   : > { %v1837_v23 = vsub.f32 %v1830_v17, %v1836_v22 }
 0x8e3   : > { %v1838_v24 = vmul.f32 %v1837_v23, %v1837_v23 }
 0x8e5   : > { %v1839_v27 = vsel %vm650_vm1, %v1838_v24, 0.0 }
 0x8e6   : > { %1840 = vadd.xlane.f32.xlu1 %v1839_v27 }
 0x96f   : > { %v1841_v28 = vpop.xlane.xlu1 %1840 }
 0x970   : > { %v1842_v29 = vmul.f32 0.03125, %v1841_v28 }
 0x972   : > { %v1843_v30 = vadd.f32 1e-05, %v1842_v29 }
 0x974   : > { %2326 = vrsqrt.f32 %v1843_v30 }
 0x981   : > { %v2327_v31 = vpop.eup %2326 }
 0x982   : > { %v1845_v34 = vmul.f32 %v2327_v31, %v1837_v23 }
 0x984   : > { %v1852_v36 = vmul.f32 %v2057_v33, %v1845_v34 }
 0x986   : > { %v1859_v37 = vadd.f32 %v2058_v35, %v1852_v36 }
 0x988   : > { %1860 = vst.msk [vmem:[%s613_s17] sm:$0xff] %vm650_vm1, %v1859_v37 }
 0x989   : > { %2447 = shalt.err (!%p2444_p4)
}
 0x98a   : > { %s2448_s20 = scalar_lea.hbm %s1874_s15, 128  ;;  %s2452_s29 = scalar_lea.hbm %s3064_s9, 256 }
 0x98b   : > { %p2449_p12 = scmp.ne.s32.totalorder %s1874_s15, %s2448_s20  ;;  %p2453_p10 = scmp.lt.s32.totalorder %s1874_s15, %s3064_s9 }
 0x98c   : > { %p2454_p7 = scmp.lt.s32.totalorder %s2452_s29, %s2448_s20 }
 0x98d   : > { %p2450_p0 = pnand %p2449_p12, %p2728_p3 }
 0x98e   : > { %p2455_p8 = por %p2454_p7, %p2453_p10 }
 0x98f   : > { %p2451_p5 = pneg %p2450_p0 }
 0x991   : > { %p2456_p6 = pnand %p2455_p8, %p2451_p5 }
 0x993   : > { %2459 = shalt.err (!%p2456_p6)
}
 0x994   : > { %2202 = dma.vmem_to_hbm [thread:$0]  (%p2728_p3), %s1877_s30, 128, %s1874_s15, %s1862_s16  }
 0x995 PF: > { %s3065_s17 = sld [smem:[#allocation16_spill]]  ;;  %p3068_p11 = scmp.ge.s32.totalorder %s2522_s26, 2 }
 0x996   : > { %s3066_s21 = sld [smem:[#allocation17_spill]] }
 0x99b   : > { %s1888_s28 = sand.u32 1, %s3065_s17  }
 0x99c   : > { %p3067_p2 = scmp.ne.s32.totalorder %s3066_s21, 0  ;;  %s1889_s13 = scalar_lea.sflag [#allocation5], %s1888_s28 }
 0x99e   : > { %p2219_p9 = pnand %p3068_p11, %p3067_p2 }
 0x9a0   : > { %p2220_p13 = pneg %p2219_p9 }
 0x9a2   : > { %2497 = dma.done.wait (%p2220_p13), %s1889_s13, 128  }
 0x9a3   : > { %2499 = vsyncadd (%p2220_p13), %s1889_s13, 4294967168  ;;  %s34_s26 = sadd.s32 1, %s2522_s26   ;;  %s3069_s27 = sld [smem:[#allocation18_spill]] }
 0x9a4   : > { %p31_p1 = scmp.ge.s32.totalorder %s34_s26, 4   ;;  %s3070_s21 = smov %s2506_s22 }
 0x9a5   : > { %s3071_s22 = smov %s2510_s23  ;;  %s3072_s23 = smov %s2740_s14 }
 0x9a6   : > { %s3073_s24 = smov %s2518_s25  ;;  %33 = sbr.rel (!%p31_p1) target bundleno = 18 (0x12), region = 148 }
 0x9a9   : > { %s3074_s25 = smov %s3069_s27 }
 0x9ab   :  { %1894 = vsyncpa [#allocation4], 1 }
 0x9ac   :  { %1896 = vsyncpa [#allocation4 + $0x1], 1 }
 0x9ad   :  { %1897 = vsyncpa [#allocation7], 1 }
 0x9ae   :  { %1898 = vsyncpa [#allocation10], 1 }
 0x9af   :  { %1899 = vsyncpa [#allocation5], 1 }
 0x9b0   :  { %1901 = vsyncpa [#allocation5 + $0x1], 1 }

</bundles_post_ra>
